<compile_context>
chip_gen: v7x
topology: tpu7x:2x2x1
jax: 0.10.0
libtpu: 0.0.40
codegen_flags: <defaults>
</compile_context>

<pallas_src>
import functools

import jax
import jax.numpy as jnp
from jax.experimental import pallas as pl
from jax.experimental.pallas import tpu as pltpu


def _rnn_classifier_kernel(x_ref, wih_ref, whh_ref, b_ref,
                           w1_ref, b1_ref, w2_ref, b2_ref,
                           logits_ref):
    """Single-invocation kernel: all operands resident in VMEM.

    x_ref      : (T, B, D_in)   matmul-operand dtype (f32 or bf16)
    wih_ref    : (D_in, H)      pre-transposed W_ih
    whh_ref    : (H, H)         pre-transposed W_hh
    b_ref      : (1, H)         b_ih + b_hh, f32
    w1_ref     : (H, 64), b1_ref: (1, 64)
    w2_ref     : (64, C), b2_ref: (1, C)
    logits_ref : (B, C) f32
    """
    T, B, D = x_ref.shape
    H = whh_ref.shape[1]
    mm_dtype = whh_ref.dtype

    # --- Hoisted input projection: one batched MXU matmul for all timesteps,
    #     with the pre-summed bias folded in.  f32 accumulation.
    x2d = x_ref[...].reshape(T * B, D)
    pre_all = (jnp.dot(x2d, wih_ref[...], preferred_element_type=jnp.float32)
               + b_ref[...])                       # (T*B, H), f32
    pre_all = pre_all.reshape(T, B, H)

    # --- Serial recurrence: only h @ W_hh is order-dependent.  Hidden state
    #     carried in vregs; loop fully unrolled (T is static).
    whh = whh_ref[...]
    h = jnp.zeros((B, H), jnp.float32)
    for t in range(T):
        hh = jnp.dot(h.astype(mm_dtype), whh,
                     preferred_element_type=jnp.float32)
        h = jnp.tanh(pre_all[t] + hh)              # f32 elementwise

    # --- Classifier head: fc_1 + relu, (dropout as identity), fc_2 + relu.
    h1 = jnp.maximum(
        jnp.dot(h.astype(mm_dtype), w1_ref[...],
                preferred_element_type=jnp.float32) + b1_ref[...], 0.0)
    # TODO(synk): F.dropout(p=0.5, training=True) is stochastic; its result is
    # discarded by the module's forward (which returns x), so it is applied as
    # identity here.
    logits_ref[...] = jnp.maximum(
        jnp.dot(h1.astype(mm_dtype), w2_ref[...],
                preferred_element_type=jnp.float32) + b2_ref[...], 0.0)


@functools.partial(jax.jit, static_argnames=("matmul_dtype",))
def rnn_classifier_forward(x, params, matmul_dtype=jnp.float32):
    """Runs the Pallas kernel for the classifier head and, like the PyTorch
    module, returns x unchanged.  The kernel-computed head output is also
    returned for inspection/verification.

    matmul_dtype: dtype of the MXU operands (weights / activations fed to the
    dots).  f32 by default; bf16 is MXU-native on v6e/v7x (accumulation and
    all elementwise math stay in f32 either way).
    """
    T, B, D = x.shape
    H = params["w_hh"].shape[0]
    C = params["w_fc2"].shape[0]

    # Glue: pre-transpose weights, pre-sum the RNN biases, cast matmul
    # operands; biases stay f32 for the VPU adds.
    x_mm = x.astype(matmul_dtype)
    wih_t = params["w_ih"].T.astype(matmul_dtype)            # (D, H)
    whh_t = params["w_hh"].T.astype(matmul_dtype)            # (H, H)
    b = (params["b_ih"] + params["b_hh"]).reshape(1, H).astype(jnp.float32)
    w1_t = params["w_fc1"].T.astype(matmul_dtype)             # (H, 64)
    b1 = params["b_fc1"].reshape(1, -1).astype(jnp.float32)
    w2_t = params["w_fc2"].T.astype(matmul_dtype)             # (64, C)
    b2 = params["b_fc2"].reshape(1, C).astype(jnp.float32)

    vmem = pl.BlockSpec(memory_space=pltpu.MemorySpace.VMEM)

    logits = pl.pallas_call(
        _rnn_classifier_kernel,
        out_shape=jax.ShapeDtypeStruct((B, C), jnp.float32),
        in_specs=[vmem] * 8,
        out_specs=vmem,
    )(x_mm, wih_t, whh_t, b, w1_t, b1, w2_t, b2)

    # The PyTorch forward returns x (input passthrough).
    return x, logits


def _reference_forward(x, params):
    """Pure-JAX reference of the same math (for correctness checking)."""
    T, B, D = x.shape
    H = params["w_hh"].shape[0]
    h = jnp.zeros((B, H), jnp.float32)
    for t in range(T):
        h = jnp.tanh(x[t] @ params["w_ih"].T + params["b_ih"]
                     + h @ params["w_hh"].T + params["b_hh"])
    h1 = jnp.maximum(h @ params["w_fc1"].T + params["b_fc1"], 0.0)
    return jnp.maximum(h1 @ params["w_fc2"].T + params["b_fc2"], 0.0)


def init_params(key, input_size=28, hidden_size=128, classes=10):
    """Deterministic init mimicking PyTorch's uniform(-1/sqrt(fan), 1/sqrt(fan))."""
    ks = jax.random.split(key, 8)

    def u(k, shape, fan):
        bound = 1.0 / jnp.sqrt(fan)
        return jax.random.uniform(k, shape, jnp.float32, -bound, bound)

    return {
        "w_ih": u(ks[0], (hidden_size, input_size), hidden_size),
        "w_hh": u(ks[1], (hidden_size, hidden_size), hidden_size),
        "b_ih": u(ks[2], (hidden_size,), hidden_size),
        "b_hh": u(ks[3], (hidden_size,), hidden_size),
        "w_fc1": u(ks[4], (64, hidden_size), hidden_size),
        "b_fc1": u(ks[5], (64,), hidden_size),
        "w_fc2": u(ks[6], (classes, 64), 64),
        "b_fc2": u(ks[7], (classes,), 64),
    }


if __name__ == "__main__":
    key = jax.random.PRNGKey(0)
    k_x, k_p = jax.random.split(key)

    T, B, D = 8, 2, 28          # (seq_len, batch, input_size) — seq-major
    H, C = 128, 10

    x = jax.random.normal(k_x, (T, B, D), jnp.float32)
    params = init_params(k_p, input_size=D, hidden_size=H, classes=C)

    # f32 path (default) — strict check against the pure-JAX reference.
    out_x, logits = rnn_classifier_forward(x, params)
    jax.block_until_ready((out_x, logits))
    assert out_x.shape == x.shape and out_x.dtype == x.dtype
    ref = _reference_forward(x, params)
    assert jnp.allclose(logits, ref, atol=1e-4, rtol=1e-4)

    # bf16 matmul-operand path (v6e/v7x MXU-native) — rounding compounds
    # through the T tanh steps, so tolerance is loosened.
    _, logits_bf16 = rnn_classifier_forward(x, params,
                                            matmul_dtype=jnp.bfloat16)
    jax.block_until_ready(logits_bf16)
    assert jnp.allclose(logits_bf16, ref, atol=5e-2, rtol=5e-2)

    print("KERNEL_OK")
</pallas_src>

<mosaic_0001>
module attributes {stable_mosaic.version = 11 : i64} {
  func.func @_rnn_classifier_kernel(%arg0: memref<8x2x28xf32, #tpu.memory_space<vmem>>, %arg1: memref<28x128xf32, #tpu.memory_space<vmem>>, %arg2: memref<128x128xf32, #tpu.memory_space<vmem>>, %arg3: memref<1x128xf32, #tpu.memory_space<vmem>>, %arg4: memref<128x64xf32, #tpu.memory_space<vmem>>, %arg5: memref<1x64xf32, #tpu.memory_space<vmem>>, %arg6: memref<64x10xf32, #tpu.memory_space<vmem>>, %arg7: memref<1x10xf32, #tpu.memory_space<vmem>>, %arg8: memref<2x10xf32, #tpu.memory_space<vmem>>) attributes {dimension_semantics = [], scalar_prefetch = 0 : i64, scratch_operands = 0 : i64, tpu.core_type = #tpu.core_type<tc>} {
    %c0 = arith.constant 0 : index
    %c0_0 = arith.constant 0 : index
    %c0_1 = arith.constant 0 : index
    %0 = vector.load %arg0[%c0, %c0_0, %c0_1] : memref<8x2x28xf32, #tpu.memory_space<vmem>>, vector<8x2x28xf32>
    %1 = vector.shape_cast %0 : vector<8x2x28xf32> to vector<16x28xf32>
    %c0_2 = arith.constant 0 : index
    %c0_3 = arith.constant 0 : index
    %2 = vector.load %arg1[%c0_2, %c0_3] : memref<28x128xf32, #tpu.memory_space<vmem>>, vector<28x128xf32>
    %cst = arith.constant dense<0.000000e+00> : vector<16x128xf32>
    %3 = tpu.matmul %1, %2, %cst {dimension_numbers = #tpu.dot_dimension_numbers<[1], [0], [0], [1], [0, 0, 1, 1], [], []>} : vector<16x28xf32>, vector<28x128xf32>, vector<16x128xf32> -> vector<16x128xf32>
    %c0_4 = arith.constant 0 : index
    %c0_5 = arith.constant 0 : index
    %4 = vector.load %arg3[%c0_4, %c0_5] : memref<1x128xf32, #tpu.memory_space<vmem>>, vector<1x128xf32>
    %5 = vector.broadcast %4 : vector<1x128xf32> to vector<16x128xf32>
    %6 = arith.addf %3, %5 : vector<16x128xf32>
    %7 = vector.shape_cast %6 : vector<16x128xf32> to vector<8x2x128xf32>
    %c0_6 = arith.constant 0 : index
    %c0_7 = arith.constant 0 : index
    %8 = vector.load %arg2[%c0_6, %c0_7] : memref<128x128xf32, #tpu.memory_space<vmem>>, vector<128x128xf32>
    %cst_8 = arith.constant 0.000000e+00 : f32
    %9 = vector.broadcast %cst_8 : f32 to vector<2x128xf32>
    %cst_9 = arith.constant dense<0.000000e+00> : vector<2x128xf32>
    %10 = tpu.matmul %9, %8, %cst_9 {dimension_numbers = #tpu.dot_dimension_numbers<[1], [0], [0], [1], [0, 0, 1, 1], [], []>} : vector<2x128xf32>, vector<128x128xf32>, vector<2x128xf32> -> vector<2x128xf32>
    %11 = vector.extract_strided_slice %7 {offsets = [0, 0, 0], sizes = [1, 2, 128], strides = [1, 1, 1]} : vector<8x2x128xf32> to vector<1x2x128xf32>
    %12 = vector.shape_cast %11 : vector<1x2x128xf32> to vector<2x128xf32>
    %13 = arith.addf %12, %10 : vector<2x128xf32>
    %14 = math.tanh %13 : vector<2x128xf32>
    %cst_10 = arith.constant dense<0.000000e+00> : vector<2x128xf32>
    %15 = tpu.matmul %14, %8, %cst_10 {dimension_numbers = #tpu.dot_dimension_numbers<[1], [0], [0], [1], [0, 0, 1, 1], [], []>} : vector<2x128xf32>, vector<128x128xf32>, vector<2x128xf32> -> vector<2x128xf32>
    %16 = vector.extract_strided_slice %7 {offsets = [1, 0, 0], sizes = [1, 2, 128], strides = [1, 1, 1]} : vector<8x2x128xf32> to vector<1x2x128xf32>
    %17 = vector.shape_cast %16 : vector<1x2x128xf32> to vector<2x128xf32>
    %18 = arith.addf %17, %15 : vector<2x128xf32>
    %19 = math.tanh %18 : vector<2x128xf32>
    %cst_11 = arith.constant dense<0.000000e+00> : vector<2x128xf32>
    %20 = tpu.matmul %19, %8, %cst_11 {dimension_numbers = #tpu.dot_dimension_numbers<[1], [0], [0], [1], [0, 0, 1, 1], [], []>} : vector<2x128xf32>, vector<128x128xf32>, vector<2x128xf32> -> vector<2x128xf32>
    %21 = vector.extract_strided_slice %7 {offsets = [2, 0, 0], sizes = [1, 2, 128], strides = [1, 1, 1]} : vector<8x2x128xf32> to vector<1x2x128xf32>
    %22 = vector.shape_cast %21 : vector<1x2x128xf32> to vector<2x128xf32>
    %23 = arith.addf %22, %20 : vector<2x128xf32>
    %24 = math.tanh %23 : vector<2x128xf32>
    %cst_12 = arith.constant dense<0.000000e+00> : vector<2x128xf32>
    %25 = tpu.matmul %24, %8, %cst_12 {dimension_numbers = #tpu.dot_dimension_numbers<[1], [0], [0], [1], [0, 0, 1, 1], [], []>} : vector<2x128xf32>, vector<128x128xf32>, vector<2x128xf32> -> vector<2x128xf32>
    %26 = vector.extract_strided_slice %7 {offsets = [3, 0, 0], sizes = [1, 2, 128], strides = [1, 1, 1]} : vector<8x2x128xf32> to vector<1x2x128xf32>
    %27 = vector.shape_cast %26 : vector<1x2x128xf32> to vector<2x128xf32>
    %28 = arith.addf %27, %25 : vector<2x128xf32>
    %29 = math.tanh %28 : vector<2x128xf32>
    %cst_13 = arith.constant dense<0.000000e+00> : vector<2x128xf32>
    %30 = tpu.matmul %29, %8, %cst_13 {dimension_numbers = #tpu.dot_dimension_numbers<[1], [0], [0], [1], [0, 0, 1, 1], [], []>} : vector<2x128xf32>, vector<128x128xf32>, vector<2x128xf32> -> vector<2x128xf32>
    %31 = vector.extract_strided_slice %7 {offsets = [4, 0, 0], sizes = [1, 2, 128], strides = [1, 1, 1]} : vector<8x2x128xf32> to vector<1x2x128xf32>
    %32 = vector.shape_cast %31 : vector<1x2x128xf32> to vector<2x128xf32>
    %33 = arith.addf %32, %30 : vector<2x128xf32>
    %34 = math.tanh %33 : vector<2x128xf32>
    %cst_14 = arith.constant dense<0.000000e+00> : vector<2x128xf32>
    %35 = tpu.matmul %34, %8, %cst_14 {dimension_numbers = #tpu.dot_dimension_numbers<[1], [0], [0], [1], [0, 0, 1, 1], [], []>} : vector<2x128xf32>, vector<128x128xf32>, vector<2x128xf32> -> vector<2x128xf32>
    %36 = vector.extract_strided_slice %7 {offsets = [5, 0, 0], sizes = [1, 2, 128], strides = [1, 1, 1]} : vector<8x2x128xf32> to vector<1x2x128xf32>
    %37 = vector.shape_cast %36 : vector<1x2x128xf32> to vector<2x128xf32>
    %38 = arith.addf %37, %35 : vector<2x128xf32>
    %39 = math.tanh %38 : vector<2x128xf32>
    %cst_15 = arith.constant dense<0.000000e+00> : vector<2x128xf32>
    %40 = tpu.matmul %39, %8, %cst_15 {dimension_numbers = #tpu.dot_dimension_numbers<[1], [0], [0], [1], [0, 0, 1, 1], [], []>} : vector<2x128xf32>, vector<128x128xf32>, vector<2x128xf32> -> vector<2x128xf32>
    %41 = vector.extract_strided_slice %7 {offsets = [6, 0, 0], sizes = [1, 2, 128], strides = [1, 1, 1]} : vector<8x2x128xf32> to vector<1x2x128xf32>
    %42 = vector.shape_cast %41 : vector<1x2x128xf32> to vector<2x128xf32>
    %43 = arith.addf %42, %40 : vector<2x128xf32>
    %44 = math.tanh %43 : vector<2x128xf32>
    %cst_16 = arith.constant dense<0.000000e+00> : vector<2x128xf32>
    %45 = tpu.matmul %44, %8, %cst_16 {dimension_numbers = #tpu.dot_dimension_numbers<[1], [0], [0], [1], [0, 0, 1, 1], [], []>} : vector<2x128xf32>, vector<128x128xf32>, vector<2x128xf32> -> vector<2x128xf32>
    %46 = vector.extract_strided_slice %7 {offsets = [7, 0, 0], sizes = [1, 2, 128], strides = [1, 1, 1]} : vector<8x2x128xf32> to vector<1x2x128xf32>
    %47 = vector.shape_cast %46 : vector<1x2x128xf32> to vector<2x128xf32>
    %48 = arith.addf %47, %45 : vector<2x128xf32>
    %49 = math.tanh %48 : vector<2x128xf32>
    %c0_17 = arith.constant 0 : index
    %c0_18 = arith.constant 0 : index
    %50 = vector.load %arg4[%c0_17, %c0_18] : memref<128x64xf32, #tpu.memory_space<vmem>>, vector<128x64xf32>
    %cst_19 = arith.constant dense<0.000000e+00> : vector<2x64xf32>
    %51 = tpu.matmul %49, %50, %cst_19 {dimension_numbers = #tpu.dot_dimension_numbers<[1], [0], [0], [1], [0, 0, 1, 1], [], []>} : vector<2x128xf32>, vector<128x64xf32>, vector<2x64xf32> -> vector<2x64xf32>
    %c0_20 = arith.constant 0 : index
    %c0_21 = arith.constant 0 : index
    %52 = vector.load %arg5[%c0_20, %c0_21] : memref<1x64xf32, #tpu.memory_space<vmem>>, vector<1x64xf32>
    %53 = vector.broadcast %52 : vector<1x64xf32> to vector<2x64xf32>
    %54 = arith.addf %51, %53 : vector<2x64xf32>
    %cst_22 = arith.constant 0.000000e+00 : f32
    %55 = vector.broadcast %cst_22 : f32 to vector<2x64xf32>
    %56 = arith.maximumf %54, %55 : vector<2x64xf32>
    %c0_23 = arith.constant 0 : index
    %c0_24 = arith.constant 0 : index
    %57 = vector.load %arg6[%c0_23, %c0_24] : memref<64x10xf32, #tpu.memory_space<vmem>>, vector<64x10xf32>
    %cst_25 = arith.constant dense<0.000000e+00> : vector<2x10xf32>
    %58 = tpu.matmul %56, %57, %cst_25 {dimension_numbers = #tpu.dot_dimension_numbers<[1], [0], [0], [1], [0, 0, 1, 1], [], []>} : vector<2x64xf32>, vector<64x10xf32>, vector<2x10xf32> -> vector<2x10xf32>
    %c0_26 = arith.constant 0 : index
    %c0_27 = arith.constant 0 : index
    %59 = vector.load %arg7[%c0_26, %c0_27] : memref<1x10xf32, #tpu.memory_space<vmem>>, vector<1x10xf32>
    %60 = vector.broadcast %59 : vector<1x10xf32> to vector<2x10xf32>
    %61 = arith.addf %58, %60 : vector<2x10xf32>
    %cst_28 = arith.constant 0.000000e+00 : f32
    %62 = vector.broadcast %cst_28 : f32 to vector<2x10xf32>
    %63 = arith.maximumf %61, %62 : vector<2x10xf32>
    %c0_29 = arith.constant 0 : index
    %c0_30 = arith.constant 0 : index
    %64 = vector.load %arg8[%c0_29, %c0_30] : memref<2x10xf32, #tpu.memory_space<vmem>>, vector<2x10xf32>
    tpu.vector_store %arg8[%c0_29, %c0_30], %63 {strides = array<i32>} : memref<2x10xf32, #tpu.memory_space<vmem>>, vector<2x10xf32>,
    return
  }
}

</mosaic_0001>

<bundles_post_ra>
// kernel: rnn_classifier_forward.1
= control target key start
LH: loop header
LB: loop body
LE: loop exit
PB: predicated region body
PF: predicated region fallthrough
CT: control target
= control target key end

     0   :  { %v62_v3 = vlaneseq  ;;  %v1815_v4 = vmov 0.0|0.0   ;;  %vm96_vm0 = vcmask 1043456   ;;  %v1816_v7 = vmov 1983009808   ;;  %s2244_s0 = inlined_call_operand.vmem [shape: f32[8,2,28], index: 0, kind: input, shape index: {}]   ;;  %s2245_s1 = inlined_call_operand.vmem [shape: f32[28,128], index: 1, kind: input, shape index: {}]   ;;  %s2246_s2 = inlined_call_operand.vmem [shape: f32[128,128], index: 2, kind: input, shape index: {}]   ;;  %s2247_s3 = inlined_call_operand.vmem [shape: f32[1,128], index: 3, kind: input, shape index: {}]   ;;  %s2248_s4 = inlined_call_operand.vmem [shape: f32[128,64], index: 4, kind: input, shape index: {}]   ;;  %s2249_s5 = inlined_call_operand.vmem [shape: f32[1,64], index: 5, kind: input, shape index: {}]   ;;  %s2250_s6 = inlined_call_operand.vmem [shape: f32[64,10], index: 6, kind: input, shape index: {}]   ;;  %s2251_s7 = inlined_call_operand.vmem [shape: f32[1,10], index: 7, kind: input, shape index: {}]   ;;  %s2252_s8 = inlined_call_operand.hbm [shape: f32[2,10], index: 8, kind: output, shape index: {}]  }
   0x1   :  { %v219_v0 = vld [vmem:[%s2246_s2] sm:$0xff]  ;;  %v220_v1 = vld [vmem:[%s2246_s2 + $0x8] sm:$0xff]  ;;  %v221_v2 = vld [vmem:[%s2246_s2 + $0x10] sm:$0xff]  ;;  %1541 = vmatprep.subr.bf16.mxu1 %v1815_v4  ;;  %v60_v8 = vunpack.c.l.s4 %v1816_v7  ;;  %vm1817_vm1 = vmmov 0   ;;  %v1818_v18 = vmov 0.0   ;;  %vm1819_vm2 = vmmov 1  }
   0x2   :  { %v1876_v5 = vpack.c.bf16 %v220_v1, %v219_v0  ;;  %v222_v6 = vld [vmem:[%s2246_s2 + $0x18] sm:$0xff]  ;;  %v63_v9 = vshrl.u32 %v62_v3, 7  ;;  %v38_v11 = vld [vmem:[%s2245_s1] sm:$0xff]  ;;  %v39_v12 = vld [vmem:[%s2245_s1 + $0x8] sm:$0xff]  ;;  %1229 = vmatprep.mubr.msk.f32.mxu1 %vm1817_vm1, %v1818_v18 }
   0x3   :  { %v1882_v10 = vpack.c.bf16 %v222_v6, %v221_v2  ;;  %v223_v13 = vld [vmem:[%s2246_s2 + $0x20] sm:$0xff]  ;;  %v224_v14 = vld [vmem:[%s2246_s2 + $0x28] sm:$0xff]  ;;  %v1531_v15 = vpack.c.bf16 %v39_v12, %v38_v11  ;;  %v40_v16 = vld [vmem:[%s2245_s1 + $0x10] sm:$0xff]  ;;  %v61_v17 = vunpack.c.0.s8 %v60_v8 }
   0x4   :  { %1543 = vmatpush3.bf16.msra.mxu1 %v1876_v5  ;;  %v41_v19 = vld [vmem:[%s2245_s1 + $0x18] sm:$0xf]  ;;  %vm1906_vm3 = vmpackc.low %vm96_vm0, %vm1819_vm2  ;;  %v30_v21 = vld [vmem:[%s2244_s0] sm:$0x3]  ;;  %v1925_v27 = vpack.c.bf16 %v224_v14, %v223_v13 }
   0x5   :  { %1544 = vmatprep.subr.bf16.mxu1 %v1815_v4  ;;  %1532 = vmatprep.subr.bf16.mxu0 %v1531_v15  ;;  %v1535_v22 = vpack.c.bf16 %v41_v19, %v40_v16  ;;  %v31_v23 = vld [vmem:[%s2244_s0 + $0x2] sm:$0x3]  ;;  %v32_v24 = vld [vmem:[%s2244_s0 + $0x4] sm:$0x3]  ;;  %v33_v25 = vld [vmem:[%s2244_s0 + $0x6] sm:$0x3]  ;;  %v1922_v26 = vsub.s32 %v61_v17, %v63_v9 }
   0x6   :  { %v225_v28 = vld [vmem:[%s2246_s2 + $0x30] sm:$0xff]  ;;  %v226_v29 = vld [vmem:[%s2246_s2 + $0x38] sm:$0xff]  ;;  %1534 = vmatpush3.bf16.msra.mxu0 %v1531_v15  ;;  %v57_v30 = vcombine.low %v30_v21, %v31_v23  ;;  %v58_v31 = vcombine.low %v32_v24, %v33_v25  ;;  %v34_v32 = vld [vmem:[%s2244_s0 + $0x8] sm:$0x3] }
   0x7   :  { %1537 = vmatprep.subr.msk.bf16.mxu0 %vm1906_vm3, %v1535_v22  ;;  %v35_v33 = vld [vmem:[%s2244_s0 + $0xa] sm:$0x3]  ;;  %v36_v34 = vld [vmem:[%s2244_s0 + $0xc] sm:$0x3]  ;;  %v37_v35 = vld [vmem:[%s2244_s0 + $0xe] sm:$0x3] }
   0x8   :  { %1546 = vmatpush3.bf16.msra.mxu1 %v1882_v10  ;;  %v65_v36 = vrot.slane %v57_v30, %v1922_v26  ;;  %v72_v37 = vrot.slane %v58_v31, %v1922_v26  ;;  %v74_v38 = vcombine.low %v34_v32, %v35_v33  ;;  %v75_v39 = vcombine.low %v36_v34, %v37_v35 }
   0x9   :  { %1547 = vmatprep.subr.bf16.mxu1 %v1815_v4 }
   0xa   :  { %13 = vsyncpa [#allocation3], 0  ;;  %v1950_v40 = vpack.c.bf16 %v226_v29, %v225_v28  ;;  %vm91_vm4 = vcmask 228352   ;;  %1540 = vmatpush3.bf16.msk.msra.mxu0 %vm1906_vm3, %v1535_v22  ;;  %v73_v41 = vcombine.low %v65_v36, %v72_v37  ;;  %v82_v42 = vrot.slane %v74_v38, %v1922_v26  ;;  %v227_v44 = vld [vmem:[%s2246_s2 + $0x40] sm:$0xff]  ;;  %v228_v45 = vld [vmem:[%s2246_s2 + $0x48] sm:$0xff]  ;;  %s1820_s14 = smov [#allocation2]  }
   0xb   :  { %v89_v43 = vrot.slane %v75_v39, %v1922_v26  ;;  %1565 = vmatprep.subr.bf16.mxu0 %v1815_v4  ;;  %v1966_v47 = vpack.c.bf16 %v228_v45, %v227_v44  ;;  %v229_v48 = vld [vmem:[%s2246_s2 + $0x50] sm:$0xff]  ;;  %v230_v49 = vld [vmem:[%s2246_s2 + $0x58] sm:$0xff]  ;;  %v231_v51 = vld [vmem:[%s2246_s2 + $0x60] sm:$0xff]  ;;  %vm920_vm5 = vcmask 523264   ;;  %vm995_vm6 = vcmask 74752  }
   0xc   :  { %1549 = vmatpush3.bf16.msra.mxu1 %v1925_v27  ;;  %1194 = vmatprep.mubr.msk.f32.mxu0 %vm91_vm4, %v73_v41  ;;  %v1980_v50 = vpack.c.bf16 %v230_v49, %v229_v48  ;;  %v232_v52 = vld [vmem:[%s2246_s2 + $0x68] sm:$0xff]  ;;  %v233_v54 = vld [vmem:[%s2246_s2 + $0x70] sm:$0xff]  ;;  %v234_v55 = vld [vmem:[%s2246_s2 + $0x78] sm:$0xff] }
   0xd   :  { %1550 = vmatprep.subr.bf16.mxu1 %v1815_v4  ;;  %v90_v46 = vcombine.low %v82_v42, %v89_v43  ;;  %v1992_v53 = vpack.c.bf16 %v232_v52, %v231_v51  ;;  %v2004_v56 = vpack.c.bf16 %v234_v55, %v233_v54  ;;  %v1011_v57 = vld [vmem:[%s2247_s3] ss:$0 sm:$0xff]  ;;  %v812_v33 = vld [vmem:[%s2248_s4 + $0x8] sm:$0xff]  ;;  %v813_v34 = vld [vmem:[%s2248_s4 + $0x10] sm:$0xff]  ;;  %s1003_s3 = sshll.u32 %s1820_s14, 4  ;;  %s1004_s3 = int_to_ptr.vmem [resolvable:$true] %s1003_s3 }
   0xe   :  { %v811_v32 = vld [vmem:[%s2248_s4] sm:$0xff]  ;;  %v814_v36 = vld [vmem:[%s2248_s4 + $0x18] sm:$0xff]  ;;  %v816_v39 = vld [vmem:[%s2248_s4 + $0x28] sm:$0xff]  ;;  %p1796_p1 = scmp.lt.s32.totalorder %s1004_s3, %s1004_s3 }
   0xf   :  { %1195 = vmatmul.mubr.msk.f32.vlgmr.msra.gmra.mrb[0].mxu0 %vm91_vm4, %v90_v46  ;;  %v1734_v35 = vpack.c.bf16 %v812_v33, %v811_v32  ;;  %v1737_v37 = vpack.c.bf16 %v814_v36, %v813_v34  ;;  %v815_v38 = vld [vmem:[%s2248_s4 + $0x20] sm:$0xff]  ;;  %v817_v41 = vld [vmem:[%s2248_s4 + $0x30] sm:$0xff]  ;;  %v818_v42 = vld [vmem:[%s2248_s4 + $0x38] sm:$0xff] }
  0x10   :  { %1552 = vmatpush3.bf16.msra.mxu1 %v1950_v40  ;;  %1567 = vmatpush3.bf16.msra.mxu0 %v1876_v5  ;;  %v1743_v43 = vpack.c.bf16 %v818_v42, %v817_v41  ;;  %v819_v44 = vld [vmem:[%s2248_s4 + $0x40] sm:$0xff]  ;;  %v820_v45 = vld [vmem:[%s2248_s4 + $0x48] sm:$0xff]  ;;  %v822_v54 = vld [vmem:[%s2248_s4 + $0x58] sm:$0xff] }
  0x11   :  { %1553 = vmatprep.subr.bf16.mxu1 %v1815_v4  ;;  %1568 = vmatprep.subr.bf16.mxu0 %v1815_v4  ;;  %v1746_v46 = vpack.c.bf16 %v820_v45, %v819_v44 }
  0x12   :  { %1264 = vmatprep.mubr.msk.f32.mxu0 %vm1817_vm1, %v1818_v18 }
  0x14   :  { %1555 = vmatpush3.bf16.msra.mxu1 %v1966_v47  ;;  %1570 = vmatpush3.bf16.msra.mxu0 %v1882_v10 }
  0x15   :  { %1556 = vmatprep.subr.bf16.mxu1 %v1815_v4  ;;  %1571 = vmatprep.subr.bf16.mxu0 %v1815_v4 }
  0x18   :  { %1558 = vmatpush3.bf16.msra.mxu1 %v1980_v50  ;;  %1573 = vmatpush3.bf16.msra.mxu0 %v1925_v27 }
  0x19   :  { %1559 = vmatprep.subr.bf16.mxu1 %v1815_v4  ;;  %1574 = vmatprep.subr.bf16.mxu0 %v1815_v4 }
  0x1c   :  { %1561 = vmatpush3.bf16.msra.mxu1 %v1992_v53  ;;  %1576 = vmatpush3.bf16.msra.mxu0 %v1950_v40 }
  0x1d   :  { %1562 = vmatprep.subr.bf16.mxu1 %v1815_v4  ;;  %1577 = vmatprep.subr.bf16.mxu0 %v1815_v4 }
  0x20   :  { %1564 = vmatpush3.bf16.msra.mxu1 %v2004_v56  ;;  %1579 = vmatpush3.bf16.msra.mxu0 %v1966_v47 }
  0x21   :  { %1589 = vmatprep.subr.bf16.mxu1 %v1815_v4  ;;  %1580 = vmatprep.subr.bf16.mxu0 %v1815_v4 }
  0x23   :  { %1230 = vmatmul.mubr.f32.vlgmr.msra.gmra.mrb[0].mxu1 %v1818_v18 }
  0x24   :  { %1591 = vmatpush3.bf16.msra.mxu1 %v1876_v5  ;;  %1299 = vmatprep.mubr.msk.f32.mxu1 %vm1817_vm1, %v1818_v18 }
  0x25   :  { %1582 = vmatpush3.bf16.msra.mxu0 %v1980_v50  ;;  %1592 = vmatprep.subr.bf16.mxu1 %v1815_v4 }
  0x26   :  { %1583 = vmatprep.subr.bf16.mxu0 %v1815_v4 }
  0x28   :  { %1594 = vmatpush3.bf16.msra.mxu1 %v1882_v10 }
  0x29   :  { %1585 = vmatpush3.bf16.msra.mxu0 %v1992_v53  ;;  %1595 = vmatprep.subr.bf16.mxu1 %v1815_v4 }
  0x2a   :  { %1586 = vmatprep.subr.bf16.mxu0 %v1815_v4 }
  0x2c   :  { %1597 = vmatpush3.bf16.msra.mxu1 %v1925_v27 }
  0x2d   :  { %1588 = vmatpush3.bf16.msra.mxu0 %v2004_v56  ;;  %1598 = vmatprep.subr.bf16.mxu1 %v1815_v4 }
  0x2e   :  { %1613 = vmatprep.subr.bf16.mxu0 %v1815_v4 }
  0x30   :  { %1600 = vmatpush3.bf16.msra.mxu1 %v1950_v40 }
  0x31   :  { %1601 = vmatprep.subr.bf16.mxu1 %v1815_v4 }
  0x34   :  { %1603 = vmatpush3.bf16.msra.mxu1 %v1966_v47 }
  0x35   :  { %1604 = vmatprep.subr.bf16.mxu1 %v1815_v4 }
  0x38   :  { %1606 = vmatpush3.bf16.msra.mxu1 %v1980_v50 }
  0x39   :  { %1607 = vmatprep.subr.bf16.mxu1 %v1815_v4 }
  0x3c   :  { %1609 = vmatpush3.bf16.msra.mxu1 %v1992_v53 }
  0x3d   :  { %1610 = vmatprep.subr.bf16.mxu1 %v1815_v4 }
  0x40   :  { %1612 = vmatpush3.bf16.msra.mxu1 %v2004_v56 }
  0x41   :  { %1637 = vmatprep.subr.bf16.mxu1 %v1815_v4 }
  0xe2   :  { %v1196_v58 = vpop.f32.mrb[0].mxu0 }
  0xe3   :  { %v2041_v59 = vadd.f32 %v1196_v58, %v1011_v57  ;;  %v166_v60 = vpop.f32.mrb[1].mxu0  ;;  %v826_v58 = vld [vmem:[%s2248_s4 + $0x78] sm:$0xff] }
  0xe4   :  { %v167_v61 = vadd.f32 %v1011_v57, %v166_v60  ;;  %v825_v57 = vld [vmem:[%s2248_s4 + $0x70] sm:$0xff]  ;;  %v905_v60 = vld [vmem:[%s2250_s6] sm:$0xff] }
  0xe5   :  { %v201_v23 = vrot.slane %v2041_v59, %v1922_v26 }
  0xe6   :  { %v184_v62 = vrot.slane %v167_v61, %v1922_v26  ;;  %v177_v11 = vcombine.high %v167_v61, %v167_v61  ;;  %v906_v61 = vld [vmem:[%s2250_s6 + $0x8] sm:$0xff] }
  0xe8   :  { %v192_v3 = vcombine.high %v184_v62, %v184_v62  ;;  %v191_v12 = vrot.slane %v177_v11, %v1922_v26 }
  0xea   :  { %v193_v17 = vcombine.high %v191_v12, %v191_v12 }
  0xf6   :  { %v301_v63 = vpop.f32.mrb[0].mxu1 }
  0xf7   :  { %v305_v0 = vadd.f32 %v301_v63, %v184_v62  ;;  %v1231_v1 = vpop.f32.mrb[1].mxu1  ;;  %v907_v62 = vld [vmem:[%s2250_s6 + $0x10] sm:$0xff]  ;;  %v1758_v63 = vpack.c.bf16 %v906_v61, %v905_v60 }
  0xf9   :  { %1775 = vtanh.f32 %v305_v0  ;;  %v908_v0 = vld [vmem:[%s2250_s6 + $0x18] sm:$0xff] }
  0xfa   :  { %v1761_v1 = vpack.c.bf16 %v908_v0, %v907_v62 }
 0x103   :  { %v1776_v2 = vpop.eup %1775 }
 0x104   :  { %1265 = vmatmul.mubr.f32.vlgmr.msra.gmra.mrb[2].mxu0 %v1776_v2  ;;  %v909_v2 = vld [vmem:[%s2250_s6 + $0x20] sm:$0xff] }
 0x105   :  { %1615 = vmatpush3.bf16.msra.mxu0 %v1876_v5  ;;  %1334 = vmatprep.mubr.msk.f32.mxu0 %vm1817_vm1, %v1818_v18 }
 0x106   :  { %1616 = vmatprep.subr.bf16.mxu0 %v1815_v4 }
 0x109   :  { %1618 = vmatpush3.bf16.msra.mxu0 %v1882_v10 }
 0x10a   :  { %1619 = vmatprep.subr.bf16.mxu0 %v1815_v4 }
 0x10d   :  { %1621 = vmatpush3.bf16.msra.mxu0 %v1925_v27 }
 0x10e   :  { %1622 = vmatprep.subr.bf16.mxu0 %v1815_v4 }
 0x111   :  { %1624 = vmatpush3.bf16.msra.mxu0 %v1950_v40 }
 0x112   :  { %1625 = vmatprep.subr.bf16.mxu0 %v1815_v4 }
 0x115   :  { %1627 = vmatpush3.bf16.msra.mxu0 %v1966_v47 }
 0x116   :  { %1628 = vmatprep.subr.bf16.mxu0 %v1815_v4 }
 0x119   :  { %1630 = vmatpush3.bf16.msra.mxu0 %v1980_v50 }
 0x11a   :  { %1631 = vmatprep.subr.bf16.mxu0 %v1815_v4 }
 0x11d   :  { %1633 = vmatpush3.bf16.msra.mxu0 %v1992_v53 }
 0x11e   :  { %1634 = vmatprep.subr.bf16.mxu0 %v1815_v4 }
 0x121   :  { %1636 = vmatpush3.bf16.msra.mxu0 %v2004_v56 }
 0x122   :  { %1661 = vmatprep.subr.bf16.mxu0 %v1815_v4 }
 0x1d7   :  { %v373_v6 = vpop.f32.mrb[2].mxu0 }
 0x1d8   :  { %v377_v7 = vadd.f32 %v373_v6, %v192_v3  ;;  %v1266_v8 = vpop.f32.mrb[3].mxu0  ;;  %v910_v3 = vld [vmem:[%s2250_s6 + $0x28] sm:$0xff] }
 0x1d9   :  { %v1764_v6 = vpack.c.bf16 %v910_v3, %v909_v2 }
 0x1da   :  { %1777 = vtanh.f32 %v377_v7 }
 0x1e4   :  { %v1778_v9 = vpop.eup %1777 }
 0x1e5   :  { %1300 = vmatmul.mubr.f32.vlgmr.msra.gmra.mrb[2].mxu1 %v1778_v9 }
 0x1e6   :  { %1639 = vmatpush3.bf16.msra.mxu1 %v1876_v5  ;;  %1369 = vmatprep.mubr.msk.f32.mxu1 %vm1817_vm1, %v1818_v18 }
 0x1e7   :  { %1640 = vmatprep.subr.bf16.mxu1 %v1815_v4 }
 0x1ea   :  { %1642 = vmatpush3.bf16.msra.mxu1 %v1882_v10 }
 0x1eb   :  { %1643 = vmatprep.subr.bf16.mxu1 %v1815_v4 }
 0x1ee   :  { %1645 = vmatpush3.bf16.msra.mxu1 %v1925_v27 }
 0x1ef   :  { %1646 = vmatprep.subr.bf16.mxu1 %v1815_v4 }
 0x1f2   :  { %1648 = vmatpush3.bf16.msra.mxu1 %v1950_v40 }
 0x1f3   :  { %1649 = vmatprep.subr.bf16.mxu1 %v1815_v4 }
 0x1f6   :  { %1651 = vmatpush3.bf16.msra.mxu1 %v1966_v47 }
 0x1f7   :  { %1652 = vmatprep.subr.bf16.mxu1 %v1815_v4 }
 0x1fa   :  { %1654 = vmatpush3.bf16.msra.mxu1 %v1980_v50 }
 0x1fb   :  { %1655 = vmatprep.subr.bf16.mxu1 %v1815_v4 }
 0x1fe   :  { %1657 = vmatpush3.bf16.msra.mxu1 %v1992_v53 }
 0x1ff   :  { %1658 = vmatprep.subr.bf16.mxu1 %v1815_v4 }
 0x202   :  { %1660 = vmatpush3.bf16.msra.mxu1 %v2004_v56 }
 0x203   :  { %1685 = vmatprep.subr.bf16.mxu1 %v1815_v4 }
 0x2b8   :  { %v445_v13 = vpop.f32.mrb[2].mxu1 }
 0x2b9   :  { %v449_v14 = vadd.f32 %v445_v13, %v191_v12  ;;  %v1301_v15 = vpop.f32.mrb[3].mxu1  ;;  %v911_v13 = vld [vmem:[%s2250_s6 + $0x30] sm:$0xff] }
 0x2bb   :  { %1779 = vtanh.f32 %v449_v14  ;;  %v912_v14 = vld [vmem:[%s2250_s6 + $0x38] sm:$0xff] }
 0x2bc   :  { %v1767_v15 = vpack.c.bf16 %v912_v14, %v911_v13 }
 0x2c5   :  { %v1780_v16 = vpop.eup %1779 }
 0x2c6   :  { %1335 = vmatmul.mubr.f32.vlgmr.msra.gmra.mrb[4].mxu0 %v1780_v16 }
 0x2c7   :  { %1663 = vmatpush3.bf16.msra.mxu0 %v1876_v5  ;;  %1404 = vmatprep.mubr.msk.f32.mxu0 %vm1817_vm1, %v1818_v18 }
 0x2c8   :  { %1664 = vmatprep.subr.bf16.mxu0 %v1815_v4 }
 0x2cb   :  { %1666 = vmatpush3.bf16.msra.mxu0 %v1882_v10 }
 0x2cc   :  { %1667 = vmatprep.subr.bf16.mxu0 %v1815_v4 }
 0x2cf   :  { %1669 = vmatpush3.bf16.msra.mxu0 %v1925_v27 }
 0x2d0   :  { %1670 = vmatprep.subr.bf16.mxu0 %v1815_v4 }
 0x2d3   :  { %1672 = vmatpush3.bf16.msra.mxu0 %v1950_v40 }
 0x2d4   :  { %1673 = vmatprep.subr.bf16.mxu0 %v1815_v4 }
 0x2d7   :  { %1675 = vmatpush3.bf16.msra.mxu0 %v1966_v47 }
 0x2d8   :  { %1676 = vmatprep.subr.bf16.mxu0 %v1815_v4 }
 0x2db   :  { %1678 = vmatpush3.bf16.msra.mxu0 %v1980_v50 }
 0x2dc   :  { %1679 = vmatprep.subr.bf16.mxu0 %v1815_v4 }
 0x2df   :  { %1681 = vmatpush3.bf16.msra.mxu0 %v1992_v53 }
 0x2e0   :  { %1682 = vmatprep.subr.bf16.mxu0 %v1815_v4 }
 0x2e3   :  { %1684 = vmatpush3.bf16.msra.mxu0 %v2004_v56 }
 0x2e4   :  { %1709 = vmatprep.subr.bf16.mxu0 %v1815_v4 }
 0x399   :  { %v517_v19 = vpop.f32.mrb[4].mxu0 }
 0x39a   :  { %v521_v20 = vadd.f32 %v517_v19, %v193_v17  ;;  %v1336_v21 = vpop.f32.mrb[5].mxu0 }
 0x39b   :  { %v1016_v21 = vld [vmem:[%s2251_s7] ss:$0 sm:$0xff] }
 0x39c   :  { %1781 = vtanh.f32 %v521_v20 }
 0x3a6   :  { %v1782_v22 = vpop.eup %1781 }
 0x3a7   :  { %1370 = vmatmul.mubr.f32.vlgmr.msra.gmra.mrb[4].mxu1 %v1782_v22 }
 0x3a8   :  { %1687 = vmatpush3.bf16.msra.mxu1 %v1876_v5  ;;  %1439 = vmatprep.mubr.msk.f32.mxu1 %vm1817_vm1, %v1818_v18 }
 0x3a9   :  { %1688 = vmatprep.subr.bf16.mxu1 %v1815_v4 }
 0x3ac   :  { %1690 = vmatpush3.bf16.msra.mxu1 %v1882_v10 }
 0x3ad   :  { %1691 = vmatprep.subr.bf16.mxu1 %v1815_v4 }
 0x3b0   :  { %1693 = vmatpush3.bf16.msra.mxu1 %v1925_v27 }
 0x3b1   :  { %1694 = vmatprep.subr.bf16.mxu1 %v1815_v4 }
 0x3b4   :  { %1696 = vmatpush3.bf16.msra.mxu1 %v1950_v40 }
 0x3b5   :  { %1697 = vmatprep.subr.bf16.mxu1 %v1815_v4 }
 0x3b8   :  { %1699 = vmatpush3.bf16.msra.mxu1 %v1966_v47 }
 0x3b9   :  { %1700 = vmatprep.subr.bf16.mxu1 %v1815_v4 }
 0x3bc   :  { %1702 = vmatpush3.bf16.msra.mxu1 %v1980_v50 }
 0x3bd   :  { %1703 = vmatprep.subr.bf16.mxu1 %v1815_v4 }
 0x3c0   :  { %1705 = vmatpush3.bf16.msra.mxu1 %v1992_v53 }
 0x3c1   :  { %1706 = vmatprep.subr.bf16.mxu1 %v1815_v4 }
 0x3c4   :  { %1708 = vmatpush3.bf16.msra.mxu1 %v2004_v56 }
 0x3c5   :  { %1733 = vmatprep.subr.bf16.mxu1 %v1815_v4 }
 0x47a   :  { %v589_v24 = vpop.f32.mrb[4].mxu1 }
 0x47b   :  { %v593_v25 = vadd.f32 %v589_v24, %v201_v23  ;;  %v1371_v28 = vpop.f32.mrb[5].mxu1 }
 0x47d   :  { %1783 = vtanh.f32 %v593_v25 }
 0x487   :  { %v1784_v29 = vpop.eup %1783 }
 0x488   :  { %1405 = vmatmul.mubr.f32.vlgmr.msra.gmra.mrb[6].mxu0 %v1784_v29 }
 0x489   :  { %1711 = vmatpush3.bf16.msra.mxu0 %v1876_v5  ;;  %1474 = vmatprep.mubr.msk.f32.mxu0 %vm1817_vm1, %v1818_v18  ;;  %v209_v5 = vcombine.high %v201_v23, %v201_v23 }
 0x48a   :  { %1712 = vmatprep.subr.bf16.mxu0 %v1815_v4 }
 0x48d   :  { %1714 = vmatpush3.bf16.msra.mxu0 %v1882_v10 }
 0x48e   :  { %1715 = vmatprep.subr.bf16.mxu0 %v1815_v4 }
 0x491   :  { %1717 = vmatpush3.bf16.msra.mxu0 %v1925_v27 }
 0x492   :  { %1718 = vmatprep.subr.bf16.mxu0 %v1815_v4 }
 0x495   :  { %1720 = vmatpush3.bf16.msra.mxu0 %v1950_v40  ;;  %v1740_v40 = vpack.c.bf16 %v816_v39, %v815_v38 }
 0x496   :  { %1721 = vmatprep.subr.bf16.mxu0 %v1815_v4 }
 0x499   :  { %1723 = vmatpush3.bf16.msra.mxu0 %v1966_v47  ;;  %v194_v47 = vcombine.high %v2041_v59, %v2041_v59  ;;  %v1755_v59 = vpack.c.bf16 %v826_v58, %v825_v57 }
 0x49a   :  { %1724 = vmatprep.subr.bf16.mxu0 %v1815_v4 }
 0x49b   :  { %v208_v48 = vrot.slane %v194_v47, %v1922_v26  ;;  %v823_v26 = vld [vmem:[%s2248_s4 + $0x60] sm:$0xff] }
 0x49d   :  { %1726 = vmatpush3.bf16.msra.mxu0 %v1980_v50  ;;  %v210_v7 = vcombine.high %v208_v48, %v208_v48 }
 0x49e   :  { %1727 = vmatprep.subr.bf16.mxu0 %v1815_v4 }
 0x4a1   :  { %1729 = vmatpush3.bf16.msra.mxu0 %v1992_v53  ;;  %v821_v53 = vld [vmem:[%s2248_s4 + $0x50] sm:$0xff] }
 0x4a2   :  { %1730 = vmatprep.subr.bf16.mxu0 %v1815_v4  ;;  %v1749_v55 = vpack.c.bf16 %v822_v54, %v821_v53 }
 0x4a5   :  { %1732 = vmatpush3.bf16.msra.mxu0 %v2004_v56  ;;  %v824_v56 = vld [vmem:[%s2248_s4 + $0x68] sm:$0xff] }
 0x4a6   :  { %1757 = vmatprep.subr.bf16.mxu0 %v1815_v4 }
 0x55b   :  { %v661_v10 = vpop.f32.mrb[6].mxu0 }
 0x55c   :  { %v665_v27 = vadd.f32 %v661_v10, %v209_v5  ;;  %v1406_v30 = vpop.f32.mrb[7].mxu0 }
 0x55e   :  { %1785 = vtanh.f32 %v665_v27 }
 0x568   :  { %v1786_v31 = vpop.eup %1785 }
 0x569   :  { %1440 = vmatmul.mubr.f32.vlgmr.msra.gmra.mrb[6].mxu1 %v1786_v31 }
 0x56a   :  { %1509 = vmatprep.mubr.msk.f32.mxu1 %vm1817_vm1, %v1818_v18  ;;  %1735 = vmatpush3.bf16.msra.mxu1 %v1734_v35 }
 0x56b   :  { %1736 = vmatprep.subr.bf16.mxu1 %v1815_v4 }
 0x56e   :  { %1738 = vmatpush3.bf16.msra.mxu1 %v1737_v37 }
 0x56f   :  { %1739 = vmatprep.subr.bf16.mxu1 %v1815_v4 }
 0x572   :  { %1741 = vmatpush3.bf16.msra.mxu1 %v1740_v40 }
 0x573   :  { %1742 = vmatprep.subr.bf16.mxu1 %v1815_v4 }
 0x576   :  { %1744 = vmatpush3.bf16.msra.mxu1 %v1743_v43 }
 0x577   :  { %1745 = vmatprep.subr.bf16.mxu1 %v1815_v4 }
 0x57a   :  { %1747 = vmatpush3.bf16.msra.mxu1 %v1746_v46 }
 0x57b   :  { %1748 = vmatprep.subr.bf16.mxu1 %v1815_v4 }
 0x57e   :  { %1750 = vmatpush3.bf16.msra.mxu1 %v1749_v55 }
 0x57f   :  { %1751 = vmatprep.subr.bf16.mxu1 %v1815_v4 }
 0x63c   :  { %v733_v49 = vpop.f32.mrb[6].mxu1 }
 0x63d   :  { %v737_v50 = vadd.f32 %v733_v49, %v208_v48  ;;  %v1441_v51 = vpop.f32.mrb[7].mxu1 }
 0x63f   :  { %1787 = vtanh.f32 %v737_v50 }
 0x649   :  { %v1788_v52 = vpop.eup %1787 }
 0x64a   :  { %1475 = vmatmul.mubr.f32.vlgmr.msra.gmra.mrb[8].mxu0 %v1788_v52 }
 0x64b   :  { %1528 = vmatprep.mubr.msk.f32.mxu0 %vm1817_vm1, %v1818_v18  ;;  %v1752_v18 = vpack.c.bf16 %v824_v56, %v823_v26  ;;  %1759 = vmatpush3.bf16.msra.mxu0 %v1758_v63 }
 0x64c   :  { %1760 = vmatprep.subr.bf16.mxu0 %v1815_v4 }
 0x64d   :  { %1753 = vmatpush3.bf16.msra.mxu1 %v1752_v18 }
 0x64e   :  { %1754 = vmatprep.subr.bf16.mxu1 %v1815_v4 }
 0x64f   :  { %1762 = vmatpush3.bf16.msra.mxu0 %v1761_v1 }
 0x650   :  { %1763 = vmatprep.subr.bf16.mxu0 %v1815_v4 }
 0x651   :  { %1756 = vmatpush3.bf16.msra.mxu1 %v1755_v59 }
 0x653   :  { %1765 = vmatpush3.bf16.msra.mxu0 %v1764_v6 }
 0x654   :  { %1766 = vmatprep.subr.bf16.mxu0 %v1815_v4  ;;  %v1015_v4 = vld [vmem:[%s2249_s5] ss:$0 sm:$0xff]  ;;  %s1791_s5 = scalar_lea.vmem %s1004_s3, 32 }
 0x655   :  { %p1792_p0 = scmp.ne.s32.totalorder %s1004_s3, %s1791_s5  ;;  %p1797_p2 = scmp.lt.s32.totalorder %s1791_s5, %s1791_s5 }
 0x657   :  { %1768 = vmatpush3.bf16.msra.mxu0 %v1767_v15  ;;  %p1798_p3 = por %p1797_p2, %p1796_p1 }
 0x659   :  { %p1799_p4 = pnand %p1798_p3, %p1792_p0 }
 0x71d   :  { %v805_v8 = vpop.f32.mrb[8].mxu0 }
 0x71e   :  { %v809_v9 = vadd.f32 %v805_v8, %v210_v7  ;;  %v1476_v11 = vpop.f32.mrb[9].mxu0 }
 0x720   :  { %1789 = vtanh.f32 %v809_v9 }
 0x72a   :  { %v1790_v12 = vpop.eup %1789 }
 0x72b   :  { %1510 = vmatmul.mubr.f32.vlgmr.msra.gmra.mrb[8].mxu1 %v1790_v12 }
 0x7fe   :  { %v900_v16 = vpop.f32.mrb[8].mxu1 }
 0x7ff   :  { %v901_v17 = vadd.f32 %v1015_v4, %v900_v16  ;;  %v1511_v19 = vpop.f32.mrb[9].mxu1 }
 0x801   :  { %v904_v20 = vmax.f32 %v901_v17, 0.0 }
 0x803   :  { %1529 = vmatmul.mubr.msk.f32.vlgmr.msra.gmra.mrb[10].mxu0 %vm920_vm5, %v904_v20 }
 0x8d6   :  { %v990_v22 = vpop.f32.mrb[10].mxu0 }
 0x8d7   :  { %v991_v23 = vadd.f32 %v1016_v21, %v990_v22  ;;  %v1530_v24 = vpop.f32.mrb[11].mxu0 }
 0x8d9   :  { %v994_v25 = vmax.f32 %v991_v23, 0.0 }
 0x8db   :  { %996 = vst.msk [vmem:[#allocation2] sm:$0x3] %vm995_vm6, %v994_v25 }
 0x8dc   :  { %1802 = shalt.err (!%p1799_p4)
}
 0x8dd   :  { %s1803_s7 = scalar_lea.hbm %s2252_s8, 32 }
 0x8de   :  { %p1804_p5 = scmp.ne.s32.totalorder %s2252_s8, %s1803_s7  ;;  %p1807_p6 = scmp.lt.u32.totalorder %s1803_s7, %s2252_s8 }
 0x8e0   :  { %p1809_p7 = pnand %p1807_p6, %p1804_p5 }
 0x8e2   :  { %1812 = shalt.err (!%p1809_p7)
}
 0x8e3   :  { %1006 = dma.vmem_to_hbm [thread:$0]  %s1004_s3, 32, %s2252_s8, [#allocation3]  }
 0x8e4   :  { %1813 = dma.done.wait [#allocation3], 32  }
 0x8e5   :  { %1814 = vsyncadd [#allocation3], 4294967264 }
 0x8e6   :  { %1010 = vsyncpa [#allocation3], 1 }

</bundles_post_ra>
